<compile_context>
chip_gen: v5e
topology: v5e:2x2
jax: 0.10.0
libtpu: 0.0.40
codegen_flags: <defaults>
</compile_context>

<pallas_src>
import jax
import jax.numpy as jnp
from jax.experimental import pallas as pl
from jax.experimental.pallas import tpu as pltpu


def _round_up(x, m):
    return ((x + m - 1) // m) * m


def _mlp_kernel(x_ref, w1_ref, b1_ref, w2_ref, b2_ref, o_ref):
    # Layer 1: (bm, n_in) @ (n_in, hid) + (1, hid), f32 accumulation on the MXU.
    h = jnp.dot(x_ref[...], w1_ref[...], preferred_element_type=jnp.float32)
    h = h + b1_ref[...].astype(jnp.float32)   # (1, hid) broadcasts over rows
    # Layer 2 (no activation between the two Linear layers in the module).
    y = jnp.dot(h.astype(w2_ref.dtype), w2_ref[...],
                preferred_element_type=jnp.float32)
    y = y + b2_ref[...].astype(jnp.float32)   # (1, n_out_padded)
    o_ref[...] = y.astype(o_ref.dtype)


def simple_mlp(x, w1, b1, w2, b2, *, block_m=512):
    """y = (x @ w1 + b1) @ w2 + b2.

    x: [B, num_inputs], w1: [num_inputs, hid], b1: [hid],
    w2: [hid, num_outputs], b2: [num_outputs] -> [B, num_outputs].
    (w1/w2 are the transposes of nn.Linear's [out, in] weights.)
    """
    B, n_in = x.shape
    hid = w1.shape[1]
    n_out = w2.shape[1]
    out_dtype = x.dtype

    # Lane-dense output: pad output features to a multiple of 128 (zero columns
    # in W2/b2 keep the math identical on the real columns).
    n_out_p = _round_up(max(n_out, 128), 128)

    # Batch tiling: tile height satisfying the sublane (8) rule; pad the batch
    # to a whole number of tiles.
    bm = min(block_m, _round_up(B, 8))
    B_p = _round_up(B, bm)

    x_p = x if B_p == B else jnp.pad(x, ((0, B_p - B), (0, 0)))
    w2_p = w2 if n_out_p == n_out else jnp.pad(w2, ((0, 0), (0, n_out_p - n_out)))
    b1_2d = b1.reshape(1, hid)
    b2_2d = b2.reshape(1, n_out)
    b2_p = b2_2d if n_out_p == n_out else jnp.pad(b2_2d, ((0, 0), (0, n_out_p - n_out)))

    grid = (B_p // bm,)

    in_itemsize = jnp.dtype(x.dtype).itemsize
    cost = pl.CostEstimate(
        flops=2 * B_p * n_in * hid + 2 * B_p * hid * n_out_p,
        transcendentals=0,
        bytes_accessed=(x_p.size + w1.size + b1_2d.size + w2_p.size + b2_p.size)
        * in_itemsize
        + B_p * n_out_p * jnp.dtype(out_dtype).itemsize,
    )

    out_p = pl.pallas_call(
        _mlp_kernel,
        out_shape=jax.ShapeDtypeStruct((B_p, n_out_p), out_dtype),
        grid=grid,
        in_specs=[
            pl.BlockSpec((bm, n_in), lambda i: (i, 0)),      # x tile, streamed per step
            pl.BlockSpec((n_in, hid), lambda i: (0, 0)),     # W1: VMEM-resident
            pl.BlockSpec((1, hid), lambda i: (0, 0)),        # b1: VMEM-resident
            pl.BlockSpec((hid, n_out_p), lambda i: (0, 0)),  # W2: VMEM-resident
            pl.BlockSpec((1, n_out_p), lambda i: (0, 0)),    # b2: VMEM-resident
        ],
        out_specs=pl.BlockSpec((bm, n_out_p), lambda i: (i, 0)),
        compiler_params=pltpu.CompilerParams(
            # Batch tiles are independent -> shard across the 2 TCs on v7x.
            dimension_semantics=("parallel",),
        ),
        cost_estimate=cost,
    )(x_p, w1, b1_2d, w2_p, b2_p)

    # Strip batch and output-feature padding.
    return out_p[:B, :n_out]


if __name__ == "__main__":
    # Shapes implied by the module's __init__ (num_inputs, hid_inputs, num_outputs).
    batch = 8
    num_inputs = 32
    hid_inputs = 64
    num_outputs = 16

    key = jax.random.PRNGKey(0)
    kx, kw1, kb1, kw2, kb2 = jax.random.split(key, 5)

    x = jax.random.normal(kx, (batch, num_inputs), dtype=jnp.float32)

    # Deterministic parameter init (PyTorch-style uniform bound 1/sqrt(fan_in)),
    # stored as [in, out] (transposed relative to nn.Linear's [out, in]).
    bound1 = 1.0 / (num_inputs ** 0.5)
    w1 = jax.random.uniform(kw1, (num_inputs, hid_inputs), jnp.float32, -bound1, bound1)
    b1 = jax.random.uniform(kb1, (hid_inputs,), jnp.float32, -bound1, bound1)

    bound2 = 1.0 / (hid_inputs ** 0.5)
    w2 = jax.random.uniform(kw2, (hid_inputs, num_outputs), jnp.float32, -bound2, bound2)
    b2 = jax.random.uniform(kb2, (num_outputs,), jnp.float32, -bound2, bound2)

    # Small-batch path (single grid step).
    out = jax.block_until_ready(simple_mlp(x, w1, b1, w2, b2))
    ref = (x @ w1 + b1) @ w2 + b2
    assert out.shape == (batch, num_outputs)
    assert jnp.allclose(out, ref, atol=1e-5, rtol=1e-5)

    # Larger-batch path: exercises the batch grid (>1 tile), resident weights,
    # and batch padding.
    big_batch = 1000
    xb = jax.random.normal(kx, (big_batch, num_inputs), dtype=jnp.float32)
    outb = jax.block_until_ready(simple_mlp(xb, w1, b1, w2, b2))
    refb = (xb @ w1 + b1) @ w2 + b2
    assert outb.shape == (big_batch, num_outputs)
    assert jnp.allclose(outb, refb, atol=1e-4, rtol=1e-5)

    print("KERNEL_OK")
</pallas_src>

<mosaic_0001>
module attributes {stable_mosaic.version = 11 : i64} {
  func.func @_mlp_kernel(%arg0: i32, %arg1: memref<8x32xf32, #tpu.memory_space<vmem>>, %arg2: memref<32x64xf32, #tpu.memory_space<vmem>>, %arg3: memref<1x64xf32, #tpu.memory_space<vmem>>, %arg4: memref<64x128xf32, #tpu.memory_space<vmem>>, %arg5: memref<1x128xf32, #tpu.memory_space<vmem>>, %arg6: memref<8x128xf32, #tpu.memory_space<vmem>>) attributes {dimension_semantics = [#tpu.dimension_semantics<parallel>], iteration_bounds = array<i64: 1>, scalar_prefetch = 0 : i64, scratch_operands = 0 : i64, tpu.core_type = #tpu.core_type<tc>, window_params = [{transform_indices = @transform_0, window_bounds = array<i64: 8, 32>}, {pipeline_mode = #tpu.pipeline_mode<synchronous>, transform_indices = @transform_1, window_bounds = array<i64: 32, 64>}, {pipeline_mode = #tpu.pipeline_mode<synchronous>, transform_indices = @transform_2, window_bounds = array<i64: 1, 64>}, {pipeline_mode = #tpu.pipeline_mode<synchronous>, transform_indices = @transform_3, window_bounds = array<i64: 64, 128>}, {pipeline_mode = #tpu.pipeline_mode<synchronous>, transform_indices = @transform_4, window_bounds = array<i64: 1, 128>}, {transform_indices = @transform_5, window_bounds = array<i64: 8, 128>}]} {
    %c0 = arith.constant 0 : index
    %c0_0 = arith.constant 0 : index
    %0 = vector.load %arg1[%c0, %c0_0] : memref<8x32xf32, #tpu.memory_space<vmem>>, vector<8x32xf32>
    %c0_1 = arith.constant 0 : index
    %c0_2 = arith.constant 0 : index
    %1 = vector.load %arg2[%c0_1, %c0_2] : memref<32x64xf32, #tpu.memory_space<vmem>>, vector<32x64xf32>
    %cst = arith.constant dense<0.000000e+00> : vector<8x64xf32>
    %2 = tpu.matmul %0, %1, %cst {dimension_numbers = #tpu.dot_dimension_numbers<[1], [0], [0], [1], [0, 0, 1, 1], [], []>} : vector<8x32xf32>, vector<32x64xf32>, vector<8x64xf32> -> vector<8x64xf32>
    %c0_3 = arith.constant 0 : index
    %c0_4 = arith.constant 0 : index
    %3 = vector.load %arg3[%c0_3, %c0_4] : memref<1x64xf32, #tpu.memory_space<vmem>>, vector<1x64xf32>
    %4 = vector.broadcast %3 : vector<1x64xf32> to vector<8x64xf32>
    %5 = arith.addf %2, %4 : vector<8x64xf32>
    %c0_5 = arith.constant 0 : index
    %c0_6 = arith.constant 0 : index
    %6 = vector.load %arg4[%c0_5, %c0_6] : memref<64x128xf32, #tpu.memory_space<vmem>>, vector<64x128xf32>
    %cst_7 = arith.constant dense<0.000000e+00> : vector<8x128xf32>
    %7 = tpu.matmul %5, %6, %cst_7 {dimension_numbers = #tpu.dot_dimension_numbers<[1], [0], [0], [1], [0, 0, 1, 1], [], []>} : vector<8x64xf32>, vector<64x128xf32>, vector<8x128xf32> -> vector<8x128xf32>
    %c0_8 = arith.constant 0 : index
    %c0_9 = arith.constant 0 : index
    %8 = vector.load %arg5[%c0_8, %c0_9] : memref<1x128xf32, #tpu.memory_space<vmem>>, vector<1x128xf32>
    %9 = vector.broadcast %8 : vector<1x128xf32> to vector<8x128xf32>
    %10 = arith.addf %7, %9 : vector<8x128xf32>
    %c0_10 = arith.constant 0 : index
    %c0_11 = arith.constant 0 : index
    %11 = vector.load %arg6[%c0_10, %c0_11] : memref<8x128xf32, #tpu.memory_space<vmem>>, vector<8x128xf32>
    tpu.vector_store %arg6[%c0_10, %c0_11], %10 {strides = array<i32>} : memref<8x128xf32, #tpu.memory_space<vmem>>, vector<8x128xf32>,
    return
  }
  func.func @transform_0(%arg0: i32) -> (i32, i32) {
    %c0_i32 = arith.constant 0 : i32
    %c0_i32_0 = arith.constant 0 : i32
    return %arg0, %c0_i32 : i32, i32
  }
  func.func @transform_1(%arg0: i32) -> (i32, i32) {
    %c0_i32 = arith.constant 0 : i32
    %c0_i32_0 = arith.constant 0 : i32
    %c0_i32_1 = arith.constant 0 : i32
    return %c0_i32, %c0_i32_0 : i32, i32
  }
  func.func @transform_2(%arg0: i32) -> (i32, i32) {
    %c0_i32 = arith.constant 0 : i32
    %c0_i32_0 = arith.constant 0 : i32
    %c0_i32_1 = arith.constant 0 : i32
    return %c0_i32, %c0_i32_0 : i32, i32
  }
  func.func @transform_3(%arg0: i32) -> (i32, i32) {
    %c0_i32 = arith.constant 0 : i32
    %c0_i32_0 = arith.constant 0 : i32
    %c0_i32_1 = arith.constant 0 : i32
    return %c0_i32, %c0_i32_0 : i32, i32
  }
  func.func @transform_4(%arg0: i32) -> (i32, i32) {
    %c0_i32 = arith.constant 0 : i32
    %c0_i32_0 = arith.constant 0 : i32
    %c0_i32_1 = arith.constant 0 : i32
    return %c0_i32, %c0_i32_0 : i32, i32
  }
  func.func @transform_5(%arg0: i32) -> (i32, i32) {
    %c0_i32 = arith.constant 0 : i32
    %c0_i32_0 = arith.constant 0 : i32
    return %arg0, %c0_i32 : i32, i32
  }
}

</mosaic_0001>

<bundles_post_ra>
// kernel: tpu_custom_call.1
= control target key start
LH: loop header
LB: loop body
LE: loop exit
PB: predicated region body
PF: predicated region fallthrough
CT: control target
= control target key end

     0   :  { %10 = vsyncpa [#allocation3], 0  ;;  %s320_s0 = inlined_call_operand.hbm [shape: f32[8,32], index: 0, kind: input, shape index: {}]   ;;  %s321_s1 = inlined_call_operand.hbm [shape: f32[32,64], index: 1, kind: input, shape index: {}]   ;;  %s322_s2 = inlined_call_operand.vmem [shape: f32[1,64], index: 2, kind: input, shape index: {}]   ;;  %s323_s3 = inlined_call_operand.hbm [shape: f32[64,128], index: 3, kind: input, shape index: {}]   ;;  %s324_s4 = inlined_call_operand.vmem [shape: f32[1,128], index: 4, kind: input, shape index: {}]   ;;  %s325_s5 = inlined_call_operand.hbm [shape: f32[8,128], index: 5, kind: output, shape index: {}]  }
   0x1   :  { %11 = vsyncpa [#allocation6], 0  ;;  %s28_s20 = sshll.u32 %s321_s1, 4  ;;  %s29_s20 = int_to_ptr.hbm [resolvable:$true] %s28_s20 }
   0x2   :  { %12 = vsyncpa [#allocation4], 0  ;;  %s266_s21 = smov [#allocation5]   ;;  %s18_s25 = sshll.u32 %s320_s0, 4  ;;  %s19_s25 = int_to_ptr.hbm [resolvable:$true] %s18_s25 }
   0x3   :  { %s30_s22 = sshll.u32 %s266_s21, 4  ;;  %s267_s26 = smov 128   ;;  %s31_s22 = int_to_ptr.vmem [resolvable:$true] %s30_s22 }
   0x4   :  { %s268_s27 = smov 8   ;;  %s269_s28 = smov [#allocation2]  }
   0x5   :  { %36 = dma.hbm_to_vmem [thread:$0]  %s29_s20, 512, %s31_s22, [#allocation6], %s267_s26, %s267_s26, %s268_s27  }
   0x6   :  { %s20_s29 = sshll.u32 %s269_s28, 4  ;;  %s43_s7 = sshll.u32 %s323_s3, 4  ;;  %s21_s29 = int_to_ptr.vmem [resolvable:$true] %s20_s29  ;;  %s44_s7 = int_to_ptr.hbm [resolvable:$true] %s43_s7 }
   0x7   :  { %23 = dma.hbm_to_vmem [thread:$0]  %s19_s25, 128, %s21_s29, [#allocation3]  }
   0x8   :  { %s270_s1 = smov [#allocation7]  }
   0x9   :  { %s45_s8 = sshll.u32 %s270_s1, 4  ;;  %s46_s8 = int_to_ptr.vmem [resolvable:$true] %s45_s8 }
   0xa   :  { %51 = dma.hbm_to_vmem [thread:$0]  %s44_s7, 1024, %s46_s8, [#allocation6], %s267_s26, %s267_s26, %s268_s27  }
   0xb   :  { %260 = dma.done.wait [#allocation3], 128  }
   0xc   :  { %261 = vsyncadd [#allocation3], 4294967168 }
   0xd   :  { %262 = dma.done.wait [#allocation6], 1536  }
   0xe   :  { %263 = vsyncadd [#allocation6], 4294965760  ;;  %v70_v0 = vld [vmem:[#allocation5 + $0x18] sm:$0xff]  ;;  %v69_v1 = vld [vmem:[#allocation5 + $0x10] sm:$0xff]  ;;  %vm75_vm0 = vcmask 261120   ;;  %vm111_vm1 = vcmask 523264  }
   0xf   :  { %91 = vmatpush.msra.mxu0 %v70_v0  ;;  %v106_v2 = vld [vmem:[#allocation7 + $0x38] sm:$0xff]  ;;  %v68_v3 = vld [vmem:[#allocation5 + $0x8] sm:$0xff]  ;;  %v105_v4 = vld [vmem:[#allocation7 + $0x30] sm:$0xff]  ;;  %s271_s11 = smov [#allocation8]   ;;  %s143_s15 = sshll.u32 %s325_s5, 4  ;;  %s144_s15 = int_to_ptr.hbm [resolvable:$true] %s143_s15 }
  0x10   :  { %123 = vmatpush.msra.mxu1 %v106_v2  ;;  %v104_v5 = vld [vmem:[#allocation7 + $0x28] sm:$0xff]  ;;  %v67_v6 = vld [vmem:[#allocation5] sm:$0xff]  ;;  %v66_v7 = vld [vmem:[#allocation2] sm:$0xff]  ;;  %s141_s12 = sshll.u32 %s271_s11, 4  ;;  %s142_s12 = int_to_ptr.vmem [resolvable:$true] %s141_s12 }
  0x11   :  { %92 = vmatpush.msra.mxu0 %v69_v1  ;;  %v103_v8 = vld [vmem:[#allocation7 + $0x20] sm:$0xff]  ;;  %v102_v9 = vld [vmem:[#allocation7 + $0x18] sm:$0xff]  ;;  %v101_v10 = vld [vmem:[#allocation7 + $0x10] sm:$0xff] }
  0x12   :  { %124 = vmatpush.msra.mxu1 %v105_v4  ;;  %v100_v11 = vld [vmem:[#allocation7 + $0x8] sm:$0xff]  ;;  %v99_v12 = vld [vmem:[#allocation7] sm:$0xff]  ;;  %v162_v13 = vld [vmem:[%s322_s2] ss:$0 sm:$0xff] }
  0x13   :  { %93 = vmatpush.msra.mxu0 %v68_v3  ;;  %v163_v16 = vld [vmem:[%s324_s4] ss:$0 sm:$0xff] }
  0x14   :  { %125 = vmatpush.msra.mxu1 %v104_v5 }
  0x15   :  { %94 = vmatpush.msra.mxu0 %v67_v6 }
  0x16   :  { %154 = vmatmul.msk.f32.vlgmr.msra.gmra.mxu0 %vm75_vm0, %v66_v7  ;;  %126 = vmatpush.msra.mxu1 %v103_v8 }
  0x18   :  { %127 = vmatpush.msra.mxu1 %v102_v9 }
  0x1a   :  { %128 = vmatpush.msra.mxu1 %v101_v10 }
  0x1c   :  { %129 = vmatpush.msra.mxu1 %v100_v11 }
  0x1e   :  { %130 = vmatpush.msra.mxu1 %v99_v12 }
  0x93   :  { %v96_v14 = vpop.f32.mrf.mxu0 }
  0x94   :  { %v97_v15 = vadd.f32 %v162_v13, %v96_v14 }
  0x96   :  { %155 = vmatmul.msk.f32.vlgmr.msra.gmra.mxu1 %vm111_vm1, %v97_v15 }
 0x113   :  { %v132_v17 = vpop.f32.mrf.mxu1 }
 0x114   :  { %v133_v18 = vadd.f32 %v163_v16, %v132_v17 }
 0x116   :  { %135 = vst [vmem:[#allocation8] sm:$0xff] %v133_v18 }
 0x117   :  { %146 = dma.vmem_to_hbm [thread:$0]  %s142_s12, 128, %s144_s15, [#allocation4]  }
 0x118   :  { %264 = dma.done.wait [#allocation4], 128  }
 0x119   :  { %265 = vsyncadd [#allocation4], 4294967168 }
 0x11a   :  { %151 = vsyncpa [#allocation3], 1 }
 0x11b   :  { %152 = vsyncpa [#allocation6], 1 }
 0x11c   :  { %153 = vsyncpa [#allocation4], 1 }

</bundles_post_ra>
